<compile_context>
chip_gen: v7x
topology: tpu7x:2x2x1
jax: 0.10.0
libtpu: 0.0.40
codegen_flags: <defaults>
</compile_context>

<pallas_src>
import math

import jax
import jax.numpy as jnp
from jax import lax
from jax.experimental import pallas as pl
from jax.experimental.pallas import tpu as pltpu


def _round_down(x, m):
    return (x // m) * m


def _make_kernel(*, n_assets, batch, asset_tile, ragged,
                 target_sharpe, max_dd, conc_limit, dd_chunk):
    a_f = float(n_assets)
    b_f = float(batch)
    sqrt_ann = math.sqrt(252.0)

    acc_w = min(asset_tile, 128)          # lane width of the accumulators
    n_groups = asset_tile // acc_w
    assert n_groups * acc_w == asset_tile

    def kernel(pos_ref, ret_ref, conf_ref, scal_ref, pr_ref,
               s_wr, s_aw, s_p2, s_c, s_c2):
        k = pl.program_id(0)

        @pl.when(k == 0)
        def _init():
            s_wr[...] = jnp.zeros_like(s_wr)
            s_aw[...] = jnp.zeros_like(s_aw)
            s_p2[...] = jnp.zeros_like(s_p2)
            s_c[...] = jnp.zeros_like(s_c)
            s_c2[...] = jnp.zeros_like(s_c2)

        # ---- streaming phase: lane-group folds, no cross-lane reduce ----
        zeros = jnp.zeros((batch, acc_w), jnp.float32)
        t_wr, t_aw, t_p2, t_c, t_c2 = zeros, zeros, zeros, zeros, zeros
        if ragged:
            lane = lax.broadcasted_iota(jnp.int32, (batch, acc_w), 1)
            base = k * asset_tile

        for g in range(n_groups):
            lo = g * acc_w
            p = pos_ref[:, lo:lo + acc_w].astype(jnp.float32)
            r = ret_ref[:, lo:lo + acc_w].astype(jnp.float32)
            c = conf_ref[:, lo:lo + acc_w].astype(jnp.float32)
            if ragged:
                # Out-of-bounds tail-block contents are not guaranteed zero;
                # mask all three so every product is an exact 0.
                valid = (base + lo + lane) < n_assets
                p = jnp.where(valid, p, 0.0)
                r = jnp.where(valid, r, 0.0)
                c = jnp.where(valid, c, 0.0)
            w = p * c
            t_wr = t_wr + w * r
            t_aw = t_aw + jnp.abs(w)
            t_p2 = t_p2 + p * p
            t_c = t_c + c
            t_c2 = t_c2 + c * c

        s_wr[...] += t_wr
        s_aw[...] += t_aw
        s_p2[...] += t_p2
        s_c[...] += t_c
        s_c2[...] += t_c2

        @pl.when(k == pl.num_programs(0) - 1)
        def _finalize():
            # Single deferred lane reduce per accumulator.
            sum_wr = jnp.sum(s_wr[...], axis=1, keepdims=True)   # (B, 1)
            sum_aw = jnp.sum(s_aw[...], axis=1, keepdims=True)
            sum_p2 = jnp.sum(s_p2[...], axis=1, keepdims=True)
            sum_c = jnp.sum(s_c[...], axis=1, keepdims=True)
            sum_c2 = jnp.sum(s_c2[...], axis=1, keepdims=True)

            port_ret = sum_wr / (sum_aw + 1e-8)                   # (B, 1)

            # Sharpe (fresh-history branch, unbiased std as torch).
            total_r = jnp.sum(port_ret)
            mean_r = total_r / b_f
            dev = port_ret - mean_r
            var_r = jnp.sum(dev * dev) / (b_f - 1.0)
            std_r = jnp.sqrt(var_r) + 1e-8
            sharpe = mean_r * 252.0 / (std_r * sqrt_ann)
            gap = jnp.maximum(target_sharpe - sharpe, 0.0)
            sharpe_loss = gap * gap                               # mean of equal rows

            # Concentration penalty.
            pos_conc = jnp.sum(sum_p2) / b_f
            conc_pen = jnp.maximum(pos_conc - conc_limit, 0.0) * 10.0

            # Confidence variance penalty (unbiased, per-row).
            # TODO(synk): single-pass sum/sum-of-squares variance is
            # cancellation-prone for very large n_assets with tiny variance.
            conf_var = (sum_c2 - sum_c * sum_c / a_f) / (a_f - 1.0)
            conf_pen = (jnp.sum(conf_var) / b_f) * 0.1

            # Drawdown: blocked prefix-sum over the batch with a scalar carry
            # (tril is O(chunk^2), never O(batch^2)).
            run_max = jnp.float32(-jnp.inf)
            carry = jnp.float32(0.0)
            n_chunks = (batch + dd_chunk - 1) // dd_chunk
            for j in range(n_chunks):
                lo = j * dd_chunk
                size = min(dd_chunk, batch - lo)
                pr_chunk = port_ret[lo:lo + size, :]              # (size, 1)
                row = lax.broadcasted_iota(jnp.int32, (size, size), 0)
                col = lax.broadcasted_iota(jnp.int32, (size, size), 1)
                tril = (row >= col).astype(jnp.float32)
                pr_lanes = jnp.broadcast_to(pr_chunk, (size, 128))
                csum = jnp.dot(tril, pr_lanes,
                               preferred_element_type=jnp.float32) + carry
                run_max = jnp.maximum(run_max, jnp.max(csum))
                carry = carry + jnp.sum(pr_chunk)

            dd = (run_max - total_r) / (run_max + 1e-8)           # total_r == csum[-1]
            dd_pen = jnp.maximum(dd - max_dd, 0.0) * 20.0

            total_pen = conc_pen + conf_pen + dd_pen
            total_loss = sharpe_loss + total_pen

            pr_ref[...] = port_ret

            lane_o = lax.broadcasted_iota(jnp.int32, (1, 128), 1)
            scal = (jnp.where(lane_o == 0, total_loss, 0.0)
                    + jnp.where(lane_o == 1, sharpe_loss, 0.0)
                    + jnp.where(lane_o == 2, sharpe, 0.0)
                    + jnp.where(lane_o == 3, conc_pen, 0.0)
                    + jnp.where(lane_o == 4, conf_pen, 0.0)
                    + jnp.where(lane_o == 5, dd_pen, 0.0)
                    + jnp.where(lane_o == 6, total_pen, 0.0))
            scal_ref[...] = scal.astype(jnp.float32)

    return kernel


def sharpe_optimized_loss(positions, returns, confidence, *,
                          target_sharpe=2.0, max_drawdown_target=0.15,
                          position_concentration_limit=0.01,
                          asset_tile=None, vmem_budget_bytes=32 << 20):
    """positions/returns/confidence: (batch, num_assets) -> dict of loss terms."""
    def _prep(x):
        x = jnp.asarray(x)
        # Keep bf16 through the DMA (halves HBM bytes); upcast in-kernel.
        return x if x.dtype == jnp.bfloat16 else x.astype(jnp.float32)

    positions = _prep(positions)
    returns = _prep(returns)
    confidence = _prep(confidence)
    batch, n_assets = positions.shape
    assert returns.shape == (batch, n_assets)
    assert confidence.shape == (batch, n_assets)

    # 3 inputs x 2 pipeline buffers, per asset column.
    bytes_per_col = 2 * batch * sum(int(x.dtype.itemsize)
                                    for x in (positions, returns, confidence))

    if asset_tile is None:
        if n_assets <= 128:
            asset_tile = n_assets                     # whole-dim block
        else:
            cand = vmem_budget_bytes // max(bytes_per_col, 1)
            cand = max(128, min(_round_down(cand, 128), 2048))
            asset_tile = min(cand, _round_down(n_assets, 128))
    if n_assets <= 128:
        asset_tile = n_assets
    else:
        assert asset_tile % 128 == 0 and 128 <= asset_tile <= n_assets

    n_tiles = pl.cdiv(n_assets, asset_tile)
    ragged = (n_assets % asset_tile) != 0
    acc_w = min(asset_tile, 128)
    dd_chunk = min(batch, 512)

    kernel = _make_kernel(
        n_assets=n_assets, batch=batch, asset_tile=asset_tile, ragged=ragged,
        target_sharpe=float(target_sharpe), max_dd=float(max_drawdown_target),
        conc_limit=float(position_concentration_limit), dd_chunk=dd_chunk)

    grid_spec = pltpu.PrefetchScalarGridSpec(
        num_scalar_prefetch=0,
        grid=(n_tiles,),
        in_specs=[pl.BlockSpec((batch, asset_tile), lambda k: (0, k))
                  for _ in range(3)],
        out_specs=[
            pl.BlockSpec((1, 128), lambda k: (0, 0)),      # packed scalars
            pl.BlockSpec((batch, 1), lambda k: (0, 0)),    # portfolio returns
        ],
        scratch_shapes=[pltpu.VMEM((batch, acc_w), jnp.float32)
                        for _ in range(5)],
    )

    # Raise the scoped VMEM limit so large double-buffered tiles pipeline fully
    # (v5e defaults to only 16 MiB); budget keeps us under v7x's 64 MiB.
    vmem_limit = int(asset_tile * bytes_per_col
                     + 5 * batch * acc_w * 4
                     + (16 << 20))
    vmem_limit = max(32 << 20, min(vmem_limit, 120 << 20))

    scal, pr_col = pl.pallas_call(
        kernel,
        out_shape=(
            jax.ShapeDtypeStruct((1, 128), jnp.float32),
            jax.ShapeDtypeStruct((batch, 1), jnp.float32),
        ),
        grid_spec=grid_spec,
        compiler_params=pltpu.CompilerParams(
            dimension_semantics=("arbitrary",),
            vmem_limit_bytes=vmem_limit),
    )(positions, returns, confidence)

    s = scal[0]
    portfolio_returns = pr_col[:, 0]
    mean_sharpe = s[2]
    return {
        "total_loss": s[0],
        "sharpe_loss": s[1],
        "mean_sharpe_ratio": mean_sharpe,
        "sharpe_ratios": jnp.full((batch,), mean_sharpe),
        "portfolio_returns": portfolio_returns,
        "concentration_penalty": s[3],
        "confidence_penalty": s[4],
        "drawdown_penalty": s[5],
        "total_penalty": s[6],
    }


def _ref_forward(positions, returns, confidence, target_sharpe=2.0,
                 max_drawdown_target=0.15, position_concentration_limit=0.01):
    """Pure-JAX reference mirroring the PyTorch forward (fresh-history branch)."""
    positions = jnp.asarray(positions, jnp.float32)
    returns = jnp.asarray(returns, jnp.float32)
    confidence = jnp.asarray(confidence, jnp.float32)
    w = positions * confidence
    psum = jnp.sum(jnp.abs(w), axis=1, keepdims=True)
    npos = w / (psum + 1e-8)
    pr = jnp.sum(npos * returns, axis=1)
    mean_r = jnp.mean(pr)
    std_r = jnp.std(pr, ddof=1) + 1e-8
    sharpe = mean_r * 252.0 / (std_r * math.sqrt(252.0))
    b = pr.shape[0]
    sharpe_ratios = jnp.full((b,), sharpe)
    sharpe_gaps = jnp.maximum(target_sharpe - sharpe_ratios, 0.0)
    sharpe_loss = jnp.mean(sharpe_gaps ** 2)
    pos_conc = jnp.mean(jnp.sum(positions ** 2, axis=1))
    conc_pen = jnp.maximum(pos_conc - position_concentration_limit, 0.0) * 10.0
    conf_pen = jnp.mean(jnp.var(confidence, axis=1, ddof=1)) * 0.1
    csum = jnp.cumsum(pr)
    run_max = jnp.max(csum)                      # == cummax(csum)[-1]
    dd = (run_max - csum[-1]) / (run_max + 1e-8)
    dd_pen = jnp.maximum(dd - max_drawdown_target, 0.0) * 20.0
    total_pen = conc_pen + conf_pen + dd_pen
    total_loss = sharpe_loss + total_pen
    return {
        "total_loss": total_loss,
        "sharpe_loss": sharpe_loss,
        "mean_sharpe_ratio": jnp.mean(sharpe_ratios),
        "sharpe_ratios": sharpe_ratios,
        "portfolio_returns": pr,
        "concentration_penalty": conc_pen,
        "confidence_penalty": conf_pen,
        "drawdown_penalty": dd_pen,
        "total_penalty": total_pen,
    }


if __name__ == "__main__":
    key = jax.random.PRNGKey(0)
    kp, kr, kc = jax.random.split(key, 3)

    # Small shapes; n_assets deliberately NOT a multiple of 128 so the in-kernel
    # ragged-tail mask (which replaced the wrapper-side jnp.pad) is exercised.
    B, A = 8, 600
    positions = jnp.tanh(jax.random.normal(kp, (B, A), jnp.float32))
    returns = 0.02 * jax.random.normal(kr, (B, A), jnp.float32)
    confidence = jax.random.uniform(kc, (B, A), jnp.float32,
                                    minval=0.0, maxval=1.0)

    ref = _ref_forward(positions, returns, confidence)

    # (a) forced small tile: multi-tile accumulation + ragged mask + 2 lane groups
    out_a = jax.block_until_ready(
        sharpe_optimized_loss(positions, returns, confidence, asset_tile=256))
    # (b) auto tile sized from the VMEM budget
    out_b = jax.block_until_ready(
        sharpe_optimized_loss(positions, returns, confidence))

    for tag, out in (("tile256", out_a), ("auto", out_b)):
        for name in ref:
            got, want = out[name], ref[name]
            assert got.shape == want.shape, (tag, name, got.shape, want.shape)
            assert bool(jnp.all(jnp.isfinite(got))), (tag, name)
            assert bool(jnp.allclose(got, want, rtol=5e-3, atol=1e-3)), \
                (tag, name, got, want)

    print("KERNEL_OK")
</pallas_src>

<mosaic_0001>
module attributes {stable_mosaic.version = 11 : i64} {
  func.func @kernel(%arg0: i32, %arg1: memref<8x256xf32, #tpu.memory_space<vmem>>, %arg2: memref<8x256xf32, #tpu.memory_space<vmem>>, %arg3: memref<8x256xf32, #tpu.memory_space<vmem>>, %arg4: memref<1x128xf32, #tpu.memory_space<vmem>>, %arg5: memref<8x1xf32, #tpu.memory_space<vmem>>, %arg6: memref<8x128xf32, #tpu.memory_space<vmem>>, %arg7: memref<8x128xf32, #tpu.memory_space<vmem>>, %arg8: memref<8x128xf32, #tpu.memory_space<vmem>>, %arg9: memref<8x128xf32, #tpu.memory_space<vmem>>, %arg10: memref<8x128xf32, #tpu.memory_space<vmem>>) attributes {dimension_semantics = [#tpu.dimension_semantics<arbitrary>], iteration_bounds = array<i64: 3>, scalar_prefetch = 0 : i64, scratch_operands = 5 : i64, tpu.core_type = #tpu.core_type<tc>, window_params = [{transform_indices = @transform_0, window_bounds = array<i64: 8, 256>}, {transform_indices = @transform_1, window_bounds = array<i64: 8, 256>}, {transform_indices = @transform_2, window_bounds = array<i64: 8, 256>}, {pipeline_mode = #tpu.pipeline_mode<synchronous>, transform_indices = @transform_3, window_bounds = array<i64: 1, 128>}, {pipeline_mode = #tpu.pipeline_mode<synchronous>, transform_indices = @transform_4, window_bounds = array<i64: 8, 1>}]} {
    %c0_i32 = arith.constant 0 : i32
    %0 = arith.cmpi eq, %arg0, %c0_i32 : i32
    %1 = arith.extui %0 : i1 to i32
    %c0_i32_0 = arith.constant 0 : i32
    %2 = arith.cmpi ne, %1, %c0_i32_0 : i32
    scf.if %2 {
      %cst_40 = arith.constant 0.000000e+00 : f32
      %72 = vector.broadcast %cst_40 : f32 to vector<8x128xf32>
      %c0_41 = arith.constant 0 : index
      %c0_42 = arith.constant 0 : index
      %73 = vector.load %arg6[%c0_41, %c0_42] : memref<8x128xf32, #tpu.memory_space<vmem>>, vector<8x128xf32>
      tpu.vector_store %arg6[%c0_41, %c0_42], %72 {strides = array<i32>} : memref<8x128xf32, #tpu.memory_space<vmem>>, vector<8x128xf32>,
      %cst_43 = arith.constant 0.000000e+00 : f32
      %74 = vector.broadcast %cst_43 : f32 to vector<8x128xf32>
      %c0_44 = arith.constant 0 : index
      %c0_45 = arith.constant 0 : index
      %75 = vector.load %arg7[%c0_44, %c0_45] : memref<8x128xf32, #tpu.memory_space<vmem>>, vector<8x128xf32>
      tpu.vector_store %arg7[%c0_44, %c0_45], %74 {strides = array<i32>} : memref<8x128xf32, #tpu.memory_space<vmem>>, vector<8x128xf32>,
      %cst_46 = arith.constant 0.000000e+00 : f32
      %76 = vector.broadcast %cst_46 : f32 to vector<8x128xf32>
      %c0_47 = arith.constant 0 : index
      %c0_48 = arith.constant 0 : index
      %77 = vector.load %arg8[%c0_47, %c0_48] : memref<8x128xf32, #tpu.memory_space<vmem>>, vector<8x128xf32>
      tpu.vector_store %arg8[%c0_47, %c0_48], %76 {strides = array<i32>} : memref<8x128xf32, #tpu.memory_space<vmem>>, vector<8x128xf32>,
      %cst_49 = arith.constant 0.000000e+00 : f32
      %78 = vector.broadcast %cst_49 : f32 to vector<8x128xf32>
      %c0_50 = arith.constant 0 : index
      %c0_51 = arith.constant 0 : index
      %79 = vector.load %arg9[%c0_50, %c0_51] : memref<8x128xf32, #tpu.memory_space<vmem>>, vector<8x128xf32>
      tpu.vector_store %arg9[%c0_50, %c0_51], %78 {strides = array<i32>} : memref<8x128xf32, #tpu.memory_space<vmem>>, vector<8x128xf32>,
      %cst_52 = arith.constant 0.000000e+00 : f32
      %80 = vector.broadcast %cst_52 : f32 to vector<8x128xf32>
      %c0_53 = arith.constant 0 : index
      %c0_54 = arith.constant 0 : index
      %81 = vector.load %arg10[%c0_53, %c0_54] : memref<8x128xf32, #tpu.memory_space<vmem>>, vector<8x128xf32>
      tpu.vector_store %arg10[%c0_53, %c0_54], %80 {strides = array<i32>} : memref<8x128xf32, #tpu.memory_space<vmem>>, vector<8x128xf32>,
    } else {
    }
    %cst = arith.constant 0.000000e+00 : f32
    %3 = vector.broadcast %cst : f32 to vector<8x128xf32>
    %4 = tpu.iota {dimensions = array<i32: 1>} : vector<8x128xi32>
    %c256_i32 = arith.constant 256 : i32
    %5 = arith.muli %arg0, %c256_i32 : i32
    %c0 = arith.constant 0 : index
    %c0_1 = arith.constant 0 : index
    %6 = vector.load %arg1[%c0, %c0_1] : memref<8x256xf32, #tpu.memory_space<vmem>>, vector<8x128xf32>
    %c0_2 = arith.constant 0 : index
    %c0_3 = arith.constant 0 : index
    %7 = vector.load %arg2[%c0_2, %c0_3] : memref<8x256xf32, #tpu.memory_space<vmem>>, vector<8x128xf32>
    %c0_4 = arith.constant 0 : index
    %c0_5 = arith.constant 0 : index
    %8 = vector.load %arg3[%c0_4, %c0_5] : memref<8x256xf32, #tpu.memory_space<vmem>>, vector<8x128xf32>
    %c0_i32_6 = arith.constant 0 : i32
    %9 = arith.addi %5, %c0_i32_6 : i32
    %10 = vector.broadcast %9 : i32 to vector<8x128xi32>
    %11 = arith.addi %10, %4 : vector<8x128xi32>
    %c600_i32 = arith.constant 600 : i32
    %12 = vector.broadcast %c600_i32 : i32 to vector<8x128xi32>
    %13 = arith.cmpi slt, %11, %12 : vector<8x128xi32>
    %cst_7 = arith.constant 0.000000e+00 : f32
    %14 = vector.broadcast %cst_7 : f32 to vector<8x128xf32>
    %15 = arith.select %13, %6, %14 : vector<8x128xi1>, vector<8x128xf32>
    %cst_8 = arith.constant 0.000000e+00 : f32
    %16 = vector.broadcast %cst_8 : f32 to vector<8x128xf32>
    %17 = arith.select %13, %7, %16 : vector<8x128xi1>, vector<8x128xf32>
    %cst_9 = arith.constant 0.000000e+00 : f32
    %18 = vector.broadcast %cst_9 : f32 to vector<8x128xf32>
    %19 = arith.select %13, %8, %18 : vector<8x128xi1>, vector<8x128xf32>
    %20 = arith.mulf %15, %19 : vector<8x128xf32>
    %21 = arith.mulf %20, %17 : vector<8x128xf32>
    %22 = arith.addf %3, %21 : vector<8x128xf32>
    %23 = math.absf %20 : vector<8x128xf32>
    %24 = arith.addf %3, %23 : vector<8x128xf32>
    %25 = arith.mulf %15, %15 : vector<8x128xf32>
    %26 = arith.addf %3, %25 : vector<8x128xf32>
    %27 = arith.addf %3, %19 : vector<8x128xf32>
    %28 = arith.mulf %19, %19 : vector<8x128xf32>
    %29 = arith.addf %3, %28 : vector<8x128xf32>
    %c0_10 = arith.constant 0 : index
    %c128 = arith.constant 128 : index
    %30 = vector.load %arg1[%c0_10, %c128] : memref<8x256xf32, #tpu.memory_space<vmem>>, vector<8x128xf32>
    %c0_11 = arith.constant 0 : index
    %c128_12 = arith.constant 128 : index
    %31 = vector.load %arg2[%c0_11, %c128_12] : memref<8x256xf32, #tpu.memory_space<vmem>>, vector<8x128xf32>
    %c0_13 = arith.constant 0 : index
    %c128_14 = arith.constant 128 : index
    %32 = vector.load %arg3[%c0_13, %c128_14] : memref<8x256xf32, #tpu.memory_space<vmem>>, vector<8x128xf32>
    %c128_i32 = arith.constant 128 : i32
    %33 = arith.addi %5, %c128_i32 : i32
    %34 = vector.broadcast %33 : i32 to vector<8x128xi32>
    %35 = arith.addi %34, %4 : vector<8x128xi32>
    %c600_i32_15 = arith.constant 600 : i32
    %36 = vector.broadcast %c600_i32_15 : i32 to vector<8x128xi32>
    %37 = arith.cmpi slt, %35, %36 : vector<8x128xi32>
    %cst_16 = arith.constant 0.000000e+00 : f32
    %38 = vector.broadcast %cst_16 : f32 to vector<8x128xf32>
    %39 = arith.select %37, %30, %38 : vector<8x128xi1>, vector<8x128xf32>
    %cst_17 = arith.constant 0.000000e+00 : f32
    %40 = vector.broadcast %cst_17 : f32 to vector<8x128xf32>
    %41 = arith.select %37, %31, %40 : vector<8x128xi1>, vector<8x128xf32>
    %cst_18 = arith.constant 0.000000e+00 : f32
    %42 = vector.broadcast %cst_18 : f32 to vector<8x128xf32>
    %43 = arith.select %37, %32, %42 : vector<8x128xi1>, vector<8x128xf32>
    %44 = arith.mulf %39, %43 : vector<8x128xf32>
    %45 = arith.mulf %44, %41 : vector<8x128xf32>
    %46 = arith.addf %22, %45 : vector<8x128xf32>
    %47 = math.absf %44 : vector<8x128xf32>
    %48 = arith.addf %24, %47 : vector<8x128xf32>
    %49 = arith.mulf %39, %39 : vector<8x128xf32>
    %50 = arith.addf %26, %49 : vector<8x128xf32>
    %51 = arith.addf %27, %43 : vector<8x128xf32>
    %52 = arith.mulf %43, %43 : vector<8x128xf32>
    %53 = arith.addf %29, %52 : vector<8x128xf32>
    %c0_19 = arith.constant 0 : index
    %c0_20 = arith.constant 0 : index
    %54 = vector.load %arg6[%c0_19, %c0_20] : memref<8x128xf32, #tpu.memory_space<vmem>>, vector<8x128xf32>
    %55 = arith.addf %54, %46 : vector<8x128xf32>
    %c0_21 = arith.constant 0 : index
    %c0_22 = arith.constant 0 : index
    %56 = vector.load %arg6[%c0_21, %c0_22] : memref<8x128xf32, #tpu.memory_space<vmem>>, vector<8x128xf32>
    tpu.vector_store %arg6[%c0_21, %c0_22], %55 {strides = array<i32>} : memref<8x128xf32, #tpu.memory_space<vmem>>, vector<8x128xf32>,
    %c0_23 = arith.constant 0 : index
    %c0_24 = arith.constant 0 : index
    %57 = vector.load %arg7[%c0_23, %c0_24] : memref<8x128xf32, #tpu.memory_space<vmem>>, vector<8x128xf32>
    %58 = arith.addf %57, %48 : vector<8x128xf32>
    %c0_25 = arith.constant 0 : index
    %c0_26 = arith.constant 0 : index
    %59 = vector.load %arg7[%c0_25, %c0_26] : memref<8x128xf32, #tpu.memory_space<vmem>>, vector<8x128xf32>
    tpu.vector_store %arg7[%c0_25, %c0_26], %58 {strides = array<i32>} : memref<8x128xf32, #tpu.memory_space<vmem>>, vector<8x128xf32>,
    %c0_27 = arith.constant 0 : index
    %c0_28 = arith.constant 0 : index
    %60 = vector.load %arg8[%c0_27, %c0_28] : memref<8x128xf32, #tpu.memory_space<vmem>>, vector<8x128xf32>
    %61 = arith.addf %60, %50 : vector<8x128xf32>
    %c0_29 = arith.constant 0 : index
    %c0_30 = arith.constant 0 : index
    %62 = vector.load %arg8[%c0_29, %c0_30] : memref<8x128xf32, #tpu.memory_space<vmem>>, vector<8x128xf32>
    tpu.vector_store %arg8[%c0_29, %c0_30], %61 {strides = array<i32>} : memref<8x128xf32, #tpu.memory_space<vmem>>, vector<8x128xf32>,
    %c0_31 = arith.constant 0 : index
    %c0_32 = arith.constant 0 : index
    %63 = vector.load %arg9[%c0_31, %c0_32] : memref<8x128xf32, #tpu.memory_space<vmem>>, vector<8x128xf32>
    %64 = arith.addf %63, %51 : vector<8x128xf32>
    %c0_33 = arith.constant 0 : index
    %c0_34 = arith.constant 0 : index
    %65 = vector.load %arg9[%c0_33, %c0_34] : memref<8x128xf32, #tpu.memory_space<vmem>>, vector<8x128xf32>
    tpu.vector_store %arg9[%c0_33, %c0_34], %64 {strides = array<i32>} : memref<8x128xf32, #tpu.memory_space<vmem>>, vector<8x128xf32>,
    %c0_35 = arith.constant 0 : index
    %c0_36 = arith.constant 0 : index
    %66 = vector.load %arg10[%c0_35, %c0_36] : memref<8x128xf32, #tpu.memory_space<vmem>>, vector<8x128xf32>
    %67 = arith.addf %66, %53 : vector<8x128xf32>
    %c0_37 = arith.constant 0 : index
    %c0_38 = arith.constant 0 : index
    %68 = vector.load %arg10[%c0_37, %c0_38] : memref<8x128xf32, #tpu.memory_space<vmem>>, vector<8x128xf32>
    tpu.vector_store %arg10[%c0_37, %c0_38], %67 {strides = array<i32>} : memref<8x128xf32, #tpu.memory_space<vmem>>, vector<8x128xf32>,
    %c2_i32 = arith.constant 2 : i32
    %69 = arith.cmpi eq, %arg0, %c2_i32 : i32
    %70 = arith.extui %69 : i1 to i32
    %c0_i32_39 = arith.constant 0 : i32
    %71 = arith.cmpi ne, %70, %c0_i32_39 : i32
    scf.if %71 {
      %c0_40 = arith.constant 0 : index
      %c0_41 = arith.constant 0 : index
      %72 = vector.load %arg6[%c0_40, %c0_41] : memref<8x128xf32, #tpu.memory_space<vmem>>, vector<8x128xf32>
      %cst_42 = arith.constant dense<0.000000e+00> : vector<8xf32>
      %73 = vector.multi_reduction <add>, %72, %cst_42 [1] : vector<8x128xf32> to vector<8xf32>
      %74 = vector.shape_cast %73 : vector<8xf32> to vector<8x1xf32>
      %c0_43 = arith.constant 0 : index
      %c0_44 = arith.constant 0 : index
      %75 = vector.load %arg7[%c0_43, %c0_44] : memref<8x128xf32, #tpu.memory_space<vmem>>, vector<8x128xf32>
      %cst_45 = arith.constant dense<0.000000e+00> : vector<8xf32>
      %76 = vector.multi_reduction <add>, %75, %cst_45 [1] : vector<8x128xf32> to vector<8xf32>
      %77 = vector.shape_cast %76 : vector<8xf32> to vector<8x1xf32>
      %c0_46 = arith.constant 0 : index
      %c0_47 = arith.constant 0 : index
      %78 = vector.load %arg8[%c0_46, %c0_47] : memref<8x128xf32, #tpu.memory_space<vmem>>, vector<8x128xf32>
      %cst_48 = arith.constant dense<0.000000e+00> : vector<8xf32>
      %79 = vector.multi_reduction <add>, %78, %cst_48 [1] : vector<8x128xf32> to vector<8xf32>
      %80 = vector.shape_cast %79 : vector<8xf32> to vector<8x1xf32>
      %c0_49 = arith.constant 0 : index
      %c0_50 = arith.constant 0 : index
      %81 = vector.load %arg9[%c0_49, %c0_50] : memref<8x128xf32, #tpu.memory_space<vmem>>, vector<8x128xf32>
      %cst_51 = arith.constant dense<0.000000e+00> : vector<8xf32>
      %82 = vector.multi_reduction <add>, %81, %cst_51 [1] : vector<8x128xf32> to vector<8xf32>
      %83 = vector.shape_cast %82 : vector<8xf32> to vector<8x1xf32>
      %c0_52 = arith.constant 0 : index
      %c0_53 = arith.constant 0 : index
      %84 = vector.load %arg10[%c0_52, %c0_53] : memref<8x128xf32, #tpu.memory_space<vmem>>, vector<8x128xf32>
      %cst_54 = arith.constant dense<0.000000e+00> : vector<8xf32>
      %85 = vector.multi_reduction <add>, %84, %cst_54 [1] : vector<8x128xf32> to vector<8xf32>
      %86 = vector.shape_cast %85 : vector<8xf32> to vector<8x1xf32>
      %cst_55 = arith.constant 9.99999993E-9 : f32
      %87 = vector.broadcast %cst_55 : f32 to vector<8x1xf32>
      %88 = arith.addf %77, %87 : vector<8x1xf32>
      %89 = arith.divf %74, %88 : vector<8x1xf32>
      %90 = vector.shape_cast %89 : vector<8x1xf32> to vector<1x8x1xf32>
      %cst_56 = arith.constant dense<0.000000e+00> : vector<1xf32>
      %91 = vector.multi_reduction <add>, %90, %cst_56 [1, 2] : vector<1x8x1xf32> to vector<1xf32>
      %92 = vector.shape_cast %91 : vector<1xf32> to vector<1x1x1xf32>
      %93 = vector.extract %92[0, 0, 0] : f32 from vector<1x1x1xf32>
      %cst_57 = arith.constant 8.000000e+00 : f32
      %94 = arith.divf %93, %cst_57 : f32
      %95 = vector.broadcast %94 : f32 to vector<8x1xf32>
      %96 = arith.subf %89, %95 : vector<8x1xf32>
      %97 = arith.mulf %96, %96 : vector<8x1xf32>
      %98 = vector.shape_cast %97 : vector<8x1xf32> to vector<1x8x1xf32>
      %cst_58 = arith.constant dense<0.000000e+00> : vector<1xf32>
      %99 = vector.multi_reduction <add>, %98, %cst_58 [1, 2] : vector<1x8x1xf32> to vector<1xf32>
      %100 = vector.shape_cast %99 : vector<1xf32> to vector<1x1x1xf32>
      %101 = vector.extract %100[0, 0, 0] : f32 from vector<1x1x1xf32>
      %cst_59 = arith.constant 7.000000e+00 : f32
      %102 = arith.divf %101, %cst_59 : f32
      %103 = math.sqrt %102 : f32
      %cst_60 = arith.constant 9.99999993E-9 : f32
      %104 = arith.addf %103, %cst_60 : f32
      %cst_61 = arith.constant 2.520000e+02 : f32
      %105 = arith.mulf %94, %cst_61 : f32
      %cst_62 = arith.constant 15.8745079 : f32
      %106 = arith.mulf %104, %cst_62 : f32
      %107 = arith.divf %105, %106 : f32
      %cst_63 = arith.constant 2.000000e+00 : f32
      %108 = arith.subf %cst_63, %107 : f32
      %cst_64 = arith.constant 0.000000e+00 : f32
      %109 = arith.maximumf %108, %cst_64 : f32
      %110 = arith.mulf %109, %109 : f32
      %111 = vector.shape_cast %80 : vector<8x1xf32> to vector<1x8x1xf32>
      %cst_65 = arith.constant dense<0.000000e+00> : vector<1xf32>
      %112 = vector.multi_reduction <add>, %111, %cst_65 [1, 2] : vector<1x8x1xf32> to vector<1xf32>
      %113 = vector.shape_cast %112 : vector<1xf32> to vector<1x1x1xf32>
      %114 = vector.extract %113[0, 0, 0] : f32 from vector<1x1x1xf32>
      %cst_66 = arith.constant 8.000000e+00 : f32
      %115 = arith.divf %114, %cst_66 : f32
      %cst_67 = arith.constant 0.00999999977 : f32
      %116 = arith.subf %115, %cst_67 : f32
      %cst_68 = arith.constant 0.000000e+00 : f32
      %117 = arith.maximumf %116, %cst_68 : f32
      %cst_69 = arith.constant 1.000000e+01 : f32
      %118 = arith.mulf %117, %cst_69 : f32
      %119 = arith.mulf %83, %83 : vector<8x1xf32>
      %cst_70 = arith.constant 6.000000e+02 : f32
      %120 = vector.broadcast %cst_70 : f32 to vector<8x1xf32>
      %121 = arith.divf %119, %120 : vector<8x1xf32>
      %122 = arith.subf %86, %121 : vector<8x1xf32>
      %cst_71 = arith.constant 5.990000e+02 : f32
      %123 = vector.broadcast %cst_71 : f32 to vector<8x1xf32>
      %124 = arith.divf %122, %123 : vector<8x1xf32>
      %125 = vector.shape_cast %124 : vector<8x1xf32> to vector<1x8x1xf32>
      %cst_72 = arith.constant dense<0.000000e+00> : vector<1xf32>
      %126 = vector.multi_reduction <add>, %125, %cst_72 [1, 2] : vector<1x8x1xf32> to vector<1xf32>
      %127 = vector.shape_cast %126 : vector<1xf32> to vector<1x1x1xf32>
      %128 = vector.extract %127[0, 0, 0] : f32 from vector<1x1x1xf32>
      %cst_73 = arith.constant 8.000000e+00 : f32
      %129 = arith.divf %128, %cst_73 : f32
      %cst_74 = arith.constant 1.000000e-01 : f32
      %130 = arith.mulf %129, %cst_74 : f32
      %131 = tpu.iota {dimensions = array<i32: 0>} : vector<8x8xi32>
      %132 = tpu.iota {dimensions = array<i32: 1>} : vector<8x8xi32>
      %133 = arith.cmpi sge, %131, %132 : vector<8x8xi32>
      %134 = arith.extui %133 : vector<8x8xi1> to vector<8x8xi32>
      %135 = arith.sitofp %134 : vector<8x8xi32> to vector<8x8xf32>
      %136 = vector.shape_cast %89 : vector<8x1xf32> to vector<8x1xf32>
      %137 = vector.broadcast %136 : vector<8x1xf32> to vector<8x128xf32>
      %cst_75 = arith.constant dense<0.000000e+00> : vector<8x128xf32>
      %138 = tpu.matmul %135, %137, %cst_75 {dimension_numbers = #tpu.dot_dimension_numbers<[1], [0], [0], [1], [0, 0, 1, 1], [], []>} : vector<8x8xf32>, vector<8x128xf32>, vector<8x128xf32> -> vector<8x128xf32>
      %cst_76 = arith.constant 0.000000e+00 : f32
      %139 = vector.broadcast %cst_76 : f32 to vector<8x128xf32>
      %140 = arith.addf %138, %139 : vector<8x128xf32>
      %141 = vector.shape_cast %140 : vector<8x128xf32> to vector<1x8x128xf32>
      %cst_77 = arith.constant dense<0xFF800000> : vector<1xf32>
      %142 = vector.multi_reduction <maximumf>, %141, %cst_77 [1, 2] : vector<1x8x128xf32> to vector<1xf32>
      %143 = vector.shape_cast %142 : vector<1xf32> to vector<1x1x1xf32>
      %144 = vector.extract %143[0, 0, 0] : f32 from vector<1x1x1xf32>
      %cst_78 = arith.constant 0xFF800000 : f32
      %145 = arith.maximumf %cst_78, %144 : f32
      %146 = arith.subf %145, %93 : f32
      %cst_79 = arith.constant 9.99999993E-9 : f32
      %147 = arith.addf %145, %cst_79 : f32
      %148 = arith.divf %146, %147 : f32
      %cst_80 = arith.constant 1.500000e-01 : f32
      %149 = arith.subf %148, %cst_80 : f32
      %cst_81 = arith.constant 0.000000e+00 : f32
      %150 = arith.maximumf %149, %cst_81 : f32
      %cst_82 = arith.constant 2.000000e+01 : f32
      %151 = arith.mulf %150, %cst_82 : f32
      %152 = arith.addf %118, %130 : f32
      %153 = arith.addf %152, %151 : f32
      %154 = arith.addf %110, %153 : f32
      %c0_83 = arith.constant 0 : index
      %c0_84 = arith.constant 0 : index
      %155 = vector.load %arg5[%c0_83, %c0_84] : memref<8x1xf32, #tpu.memory_space<vmem>>, vector<8x1xf32>
      tpu.vector_store %arg5[%c0_83, %c0_84], %89 {strides = array<i32>} : memref<8x1xf32, #tpu.memory_space<vmem>>, vector<8x1xf32>,
      %156 = tpu.iota {dimensions = array<i32: 1>} : vector<1x128xi32>
      %c0_i32_85 = arith.constant 0 : i32
      %157 = vector.broadcast %c0_i32_85 : i32 to vector<1x128xi32>
      %158 = arith.cmpi eq, %156, %157 : vector<1x128xi32>
      %cst_86 = arith.constant 0.000000e+00 : f32
      %159 = vector.broadcast %154 : f32 to vector<1x128xf32>
      %160 = vector.broadcast %cst_86 : f32 to vector<1x128xf32>
      %161 = arith.select %158, %159, %160 : vector<1x128xi1>, vector<1x128xf32>
      %c1_i32 = arith.constant 1 : i32
      %162 = vector.broadcast %c1_i32 : i32 to vector<1x128xi32>
      %163 = arith.cmpi eq, %156, %162 : vector<1x128xi32>
      %cst_87 = arith.constant 0.000000e+00 : f32
      %164 = vector.broadcast %110 : f32 to vector<1x128xf32>
      %165 = vector.broadcast %cst_87 : f32 to vector<1x128xf32>
      %166 = arith.select %163, %164, %165 : vector<1x128xi1>, vector<1x128xf32>
      %167 = arith.addf %161, %166 : vector<1x128xf32>
      %c2_i32_88 = arith.constant 2 : i32
      %168 = vector.broadcast %c2_i32_88 : i32 to vector<1x128xi32>
      %169 = arith.cmpi eq, %156, %168 : vector<1x128xi32>
      %cst_89 = arith.constant 0.000000e+00 : f32
      %170 = vector.broadcast %107 : f32 to vector<1x128xf32>
      %171 = vector.broadcast %cst_89 : f32 to vector<1x128xf32>
      %172 = arith.select %169, %170, %171 : vector<1x128xi1>, vector<1x128xf32>
      %173 = arith.addf %167, %172 : vector<1x128xf32>
      %c3_i32 = arith.constant 3 : i32
      %174 = vector.broadcast %c3_i32 : i32 to vector<1x128xi32>
      %175 = arith.cmpi eq, %156, %174 : vector<1x128xi32>
      %cst_90 = arith.constant 0.000000e+00 : f32
      %176 = vector.broadcast %118 : f32 to vector<1x128xf32>
      %177 = vector.broadcast %cst_90 : f32 to vector<1x128xf32>
      %178 = arith.select %175, %176, %177 : vector<1x128xi1>, vector<1x128xf32>
      %179 = arith.addf %173, %178 : vector<1x128xf32>
      %c4_i32 = arith.constant 4 : i32
      %180 = vector.broadcast %c4_i32 : i32 to vector<1x128xi32>
      %181 = arith.cmpi eq, %156, %180 : vector<1x128xi32>
      %cst_91 = arith.constant 0.000000e+00 : f32
      %182 = vector.broadcast %130 : f32 to vector<1x128xf32>
      %183 = vector.broadcast %cst_91 : f32 to vector<1x128xf32>
      %184 = arith.select %181, %182, %183 : vector<1x128xi1>, vector<1x128xf32>
      %185 = arith.addf %179, %184 : vector<1x128xf32>
      %c5_i32 = arith.constant 5 : i32
      %186 = vector.broadcast %c5_i32 : i32 to vector<1x128xi32>
      %187 = arith.cmpi eq, %156, %186 : vector<1x128xi32>
      %cst_92 = arith.constant 0.000000e+00 : f32
      %188 = vector.broadcast %151 : f32 to vector<1x128xf32>
      %189 = vector.broadcast %cst_92 : f32 to vector<1x128xf32>
      %190 = arith.select %187, %188, %189 : vector<1x128xi1>, vector<1x128xf32>
      %191 = arith.addf %185, %190 : vector<1x128xf32>
      %c6_i32 = arith.constant 6 : i32
      %192 = vector.broadcast %c6_i32 : i32 to vector<1x128xi32>
      %193 = arith.cmpi eq, %156, %192 : vector<1x128xi32>
      %cst_93 = arith.constant 0.000000e+00 : f32
      %194 = vector.broadcast %153 : f32 to vector<1x128xf32>
      %195 = vector.broadcast %cst_93 : f32 to vector<1x128xf32>
      %196 = arith.select %193, %194, %195 : vector<1x128xi1>, vector<1x128xf32>
      %197 = arith.addf %191, %196 : vector<1x128xf32>
      %c0_94 = arith.constant 0 : index
      %c0_95 = arith.constant 0 : index
      %198 = vector.load %arg4[%c0_94, %c0_95] : memref<1x128xf32, #tpu.memory_space<vmem>>, vector<1x128xf32>
      tpu.vector_store %arg4[%c0_94, %c0_95], %197 {strides = array<i32>} : memref<1x128xf32, #tpu.memory_space<vmem>>, vector<1x128xf32>,
    } else {
    }
    return
  }
  func.func @transform_0(%arg0: i32) -> (i32, i32) {
    %c0_i32 = arith.constant 0 : i32
    %c0_i32_0 = arith.constant 0 : i32
    return %c0_i32, %arg0 : i32, i32
  }
  func.func @transform_1(%arg0: i32) -> (i32, i32) {
    %c0_i32 = arith.constant 0 : i32
    %c0_i32_0 = arith.constant 0 : i32
    return %c0_i32, %arg0 : i32, i32
  }
  func.func @transform_2(%arg0: i32) -> (i32, i32) {
    %c0_i32 = arith.constant 0 : i32
    %c0_i32_0 = arith.constant 0 : i32
    return %c0_i32, %arg0 : i32, i32
  }
  func.func @transform_3(%arg0: i32) -> (i32, i32) {
    %c0_i32 = arith.constant 0 : i32
    %c0_i32_0 = arith.constant 0 : i32
    %c0_i32_1 = arith.constant 0 : i32
    return %c0_i32, %c0_i32_0 : i32, i32
  }
  func.func @transform_4(%arg0: i32) -> (i32, i32) {
    %c0_i32 = arith.constant 0 : i32
    %c0_i32_0 = arith.constant 0 : i32
    %c0_i32_1 = arith.constant 0 : i32
    return %c0_i32, %c0_i32_0 : i32, i32
  }
}

</mosaic_0001>

<bundles_post_ra>
// kernel: tpu_custom_call.1
= control target key start
LH: loop header
LB: loop body
LE: loop exit
PB: predicated region body
PF: predicated region fallthrough
CT: control target
= control target key end

     0   :  { %s1270_s0 = inlined_call_operand.hbm [shape: f32[8,600], index: 0, kind: input, shape index: {}]   ;;  %s1271_s1 = inlined_call_operand.hbm [shape: f32[8,600], index: 1, kind: input, shape index: {}]   ;;  %s1272_s2 = inlined_call_operand.hbm [shape: f32[8,600], index: 2, kind: input, shape index: {}]   ;;  %s1273_s3 = inlined_call_operand.hbm [shape: f32[1,128], index: 3, kind: output, shape index: {0}]   ;;  %s1274_s4 = inlined_call_operand.vmem [shape: f32[8,1], index: 4, kind: output, shape index: {1}]  }
   0x1   :  { %1277 = sst [smem:[#allocation17_spill]] %s1270_s0 }
   0x2   :  { %1278 = sst [smem:[#allocation18_spill]] %s1271_s1 }
   0x3   :  { %10 = vsyncpa [#allocation8], 0 }
   0x4   :  { %12 = vsyncpa [#allocation8 + $0x1], 0 }
   0x5   :  { %13 = vsyncpa [#allocation11], 0 }
   0x6   :  { %15 = vsyncpa [#allocation11 + $0x1], 0 }
   0x7   :  { %16 = vsyncpa [#allocation9], 0  ;;  %s1020_s15 = smov 0   ;;  %s1022_s16 = smov 0  }
   0x8   :  { %s1024_s17 = smov 0   ;;  %s1026_s18 = smov 0  }
   0x9 LB: > { %s1039_s19 = sadd.s32 4294967295, %s985_s18   ;;  %s1042_s20 = sadd.s32 1, %s985_s18   ;;  %s985_s18 = sphi %s1026_s18, %s1289_s18   ;;  %s981_s17 = sphi %s1024_s17, %s1288_s17   ;;  %s977_s16 = sphi %s1022_s16, %s1287_s16   ;;  %s973_s15 = sphi %s1020_s15, %s1286_s15  }
   0xa   : > { %s26_s21 = ssub.s32 %s985_s18, %s1042_s20  ;;  %s29_s22 = sadd.s32 1, %s981_s17 }
   0xb   : > { %p27_p0 = scmp.eq.s32.totalorder %s26_s21, 0  ;;  %p36_p1 = scmp.ne.s32.totalorder %s981_s17, %s977_s16 }
   0xc   : > { %p37_p2 = scmp.eq.s32.totalorder %s985_s18, 0  ;;  %p42_p3 = scmp.ne.s32.totalorder %s977_s16, %s973_s15 }
   0xd   : > { %s1052_s23 = scalar_select %p27_p0, %s981_s17, %s29_s22  }
   0xe   : > { %p1054_p4 = por %p37_p2, %p36_p1  ;;  %p43_p5 = scmp.eq.s32.totalorder %s1039_s19, 0 }
   0xf   : > { %p716_p7 = scmp.ge.s32.totalorder %s985_s18, 3 }
  0x10   : > { %s1279_s24 = scalar_select %p1054_p4, 1, 0 }
  0x11   : > { %p1059_p6 = por %p43_p5, %p42_p3  ;;  %156 = sbr.rel (%p716_p7) target bundleno = 140 (0x8c), region = 16 }
  0x13   : > { %s1280_s25 = scalar_select %p1059_p6, 1, 0 }
  0x18   : > { %159 = sbr.rel (!%p1054_p4) target bundleno = 63 (0x3f), region = 20  ;;  %s160_s26 = sand.u32 (%p1054_p4), 1, %s981_s17  }
  0x19   : > { %s718_s27 = sshll.u32 (%p1054_p4), %s985_s18, 1  ;;  %s717_s28 = sshll.u32 (%p1054_p4), %s160_s26, 4 }
  0x1a   : > { %s166_s29 = ssub.s32 (%p1054_p4), 5, %s718_s27  ;;  %s1071_s6 = scalar_lea.sflag (%p1054_p4), [#allocation8], %s160_s26 }
  0x1b   : > { %p167_p8 = scmp.lt.s32.totalorder (%p1054_p4), %s166_s29, 2  ;;  %s164_s7 = scalar_lea.vmem (%p1054_p4), [#allocation7], %s717_s28 }
  0x1f   : > { %s1291_s29 = smov (!%p167_p8, %s166_s29), 2 }
  0x20   : > { %s1068_s30 = sshll.u32 %s1291_s29, 7 }
  0x21   : > { %s171_s5 = ssub.s32 256, %s1068_s30 }
  0x22   : > { %172 = vsyncadd %s1071_s6, %s171_s5  ;;  %p720_p9 = scmp.ne.s32.totalorder %s1068_s30, 0  ;;  %s753_s8 = sshll.u32 %s985_s18, 8 }
  0x23   : > { %s1281_s0 = sld [smem:[#allocation17_spill]]  ;;  %s178_s12 = sshll.u32 %s164_s7, 4  ;;  %s179_s12 = int_to_ptr.vmem [resolvable:$true] %s178_s12 }
  0x29   : > { %s1079_s11 = scalar_lea.hbm %s1281_s0, %s753_s8  ;;  %s837_s21 = scalar_lea.hbm %s1281_s0, 640 }
  0x2a   : > { %s833_s13 = scalar_lea.hbm %s1079_s11, %s1068_s30  ;;  %p838_p13 = scmp.lt.u32.totalorder %s1079_s11, %s1281_s0 }
  0x2b   : > { %p834_p10 = scmp.ne.s32.totalorder %s1079_s11, %s833_s13  ;;  %p839_p0 = scmp.lt.u32.totalorder %s837_s21, %s833_s13 }
  0x2c   : > { %p841_p2 = scmp.lt.u32.totalorder %s833_s13, %s1079_s11 }
  0x2d   : > { %p835_p11 = pnand %p834_p10, %p720_p9  ;;  %p840_p1 = por %p839_p0, %p838_p13 }
  0x2f   : > { %p836_p12 = pneg %p835_p11  ;;  %p842_p3 = por %p841_p2, %p840_p1 }
  0x31   : > { %p843_p5 = pnand %p842_p3, %p836_p12 }
  0x33   : > { %846 = shalt.err (!%p843_p5)
}
  0x34   : > { %s847_s27 = scalar_lea.vmem %s179_s12, %s1068_s30  ;;  %s987_s28 = smov [#allocation7]  }
  0x35   : > { %p848_p7 = scmp.ne.s32.totalorder %s179_s12, %s847_s27  ;;  %s851_s29 = sshll.u32 %s987_s28, 4  ;;  %s852_s29 = int_to_ptr.vmem [resolvable:$false] %s851_s29 }
  0x36   : > { %s853_s5 = scalar_lea.vmem %s852_s29, 512  ;;  %p854_p11 = scmp.lt.s32.totalorder %s179_s12, %s852_s29 }
  0x37   : > { %p849_p8 = pnand %p848_p7, %p720_p9  ;;  %p855_p6 = scmp.lt.s32.totalorder %s853_s5, %s847_s27 }
  0x39   : > { %p850_p10 = pneg %p849_p8  ;;  %p856_p4 = por %p855_p6, %p854_p11 }
  0x3b   : > { %p857_p0 = pnand %p856_p4, %p850_p10 }
  0x3d   : > { %860 = shalt.err (!%p857_p0)
}
  0x3e   : > { %181 = dma.hbm_to_vmem [thread:$0]  (%p720_p9), %s1079_s11, %s1068_s30, %s179_s12, %s1071_s6  }
  0x3f PF: > { %p1282_p12 = scmp.ne.s32.totalorder %s1279_s24, 0 }
  0x40   : > { %s185_s7 = sand.u32 (%p1282_p12), 1, %s985_s18   ;;  %s187_s8 = sand.u32 (%p1282_p12), 1, %s981_s17  }
  0x41   : > { %184 = sbr.rel (!%p1282_p12) target bundleno = 104 (0x68), region = 24  ;;  %s724_s9 = sshll.u32 (%p1282_p12), %s187_s8, 4 }
  0x42   : > { %s725_s10 = sshll.u32 (%p1282_p12), %s985_s18, 1  ;;  %s1110_s21 = scalar_lea.sflag (%p1282_p12), [#allocation11], %s185_s7 }
  0x43   : > { %s191_s13 = ssub.s32 (%p1282_p12), 5, %s725_s10  ;;  %s189_s30 = scalar_lea.vmem (%p1282_p12), [#allocation10], %s724_s9 }
  0x44   : > { %p192_p4 = scmp.lt.s32.totalorder (%p1282_p12), %s191_s13, 2 }
  0x48   : > { %s1293_s13 = smov (!%p192_p4, %s191_s13), 2 }
  0x49   : > { %s1107_s14 = sshll.u32 %s1293_s13, 7 }
  0x4a   : > { %s196_s15 = ssub.s32 256, %s1107_s14 }
  0x4b   : > { %197 = vsyncadd %s1110_s21, %s196_s15  ;;  %p727_p6 = scmp.ne.s32.totalorder %s1107_s14, 0  ;;  %s754_s6 = sshll.u32 %s985_s18, 8 }
  0x4c   : > { %s1283_s1 = sld [smem:[#allocation18_spill]]  ;;  %s203_s26 = sshll.u32 %s189_s30, 4  ;;  %s204_s26 = int_to_ptr.vmem [resolvable:$true] %s203_s26 }
  0x52   : > { %s1118_s22 = scalar_lea.hbm %s1283_s1, %s754_s6  ;;  %s865_s5 = scalar_lea.hbm %s1283_s1, 640 }
  0x53   : > { %s861_s27 = scalar_lea.hbm %s1118_s22, %s1107_s14  ;;  %p866_p2 = scmp.lt.u32.totalorder %s1118_s22, %s1283_s1 }
  0x54   : > { %p862_p9 = scmp.ne.s32.totalorder %s1118_s22, %s861_s27  ;;  %p867_p3 = scmp.lt.u32.totalorder %s865_s5, %s861_s27 }
  0x55   : > { %p869_p7 = scmp.lt.u32.totalorder %s861_s27, %s1118_s22 }
  0x56   : > { %p863_p13 = pnand %p862_p9, %p727_p6  ;;  %p868_p5 = por %p867_p3, %p866_p2 }
  0x58   : > { %p864_p1 = pneg %p863_p13  ;;  %p870_p8 = por %p869_p7, %p868_p5 }
  0x5a   : > { %p871_p10 = pnand %p870_p8, %p864_p1 }
  0x5c   : > { %874 = shalt.err (!%p871_p10)
}
  0x5d   : > { %s875_s9 = scalar_lea.vmem %s204_s26, %s1107_s14  ;;  %s988_s10 = smov [#allocation10]  }
  0x5e   : > { %p876_p11 = scmp.ne.s32.totalorder %s204_s26, %s875_s9  ;;  %s879_s13 = sshll.u32 %s988_s10, 4  ;;  %s880_s13 = int_to_ptr.vmem [resolvable:$false] %s879_s13 }
  0x5f   : > { %s881_s15 = scalar_lea.vmem %s880_s13, 512  ;;  %p882_p4 = scmp.lt.s32.totalorder %s204_s26, %s880_s13 }
  0x60   : > { %p877_p0 = pnand %p876_p11, %p727_p6  ;;  %p883_p9 = scmp.lt.s32.totalorder %s881_s15, %s875_s9 }
  0x62   : > { %p878_p12 = pneg %p877_p0  ;;  %p884_p13 = por %p883_p9, %p882_p4 }
  0x64   : > { %p885_p2 = pnand %p884_p13, %p878_p12 }
  0x66   : > { %888 = shalt.err (!%p885_p2)
}
  0x67   : > { %206 = dma.hbm_to_vmem [thread:$0]  (%p727_p6), %s1118_s22, %s1107_s14, %s204_s26, %s1110_s21  }
  0x68 PF: > { %p1284_p1 = scmp.ne.s32.totalorder %s1279_s24, 0 }
  0x69   : > { %s210_s30 = sand.u32 (%p1284_p1), 1, %s985_s18   ;;  %s212_s6 = sand.u32 (%p1284_p1), 1, %s981_s17  }
  0x6a   : > { %209 = sbr.rel (!%p1284_p1) target bundleno = 140 (0x8c), region = 28  ;;  %s731_s11 = sshll.u32 (%p1284_p1), %s212_s6, 4 }
  0x6b   : > { %s732_s12 = sshll.u32 (%p1284_p1), %s985_s18, 1  ;;  %s1149_s5 = scalar_lea.sflag (%p1284_p1), [#allocation11], %s210_s30 }
  0x6c   : > { %s216_s27 = ssub.s32 (%p1284_p1), 5, %s732_s12  ;;  %s214_s14 = scalar_lea.vmem (%p1284_p1), [#allocation12], %s731_s11 }
  0x6d   : > { %p217_p3 = scmp.lt.s32.totalorder (%p1284_p1), %s216_s27, 2 }
  0x71   : > { %s1295_s27 = smov (!%p217_p3, %s216_s27), 2 }
  0x72   : > { %s1146_s28 = sshll.u32 %s1295_s27, 7 }
  0x73   : > { %s221_s29 = ssub.s32 256, %s1146_s28 }
  0x74   : > { %222 = vsyncadd %s1149_s5, %s221_s29  ;;  %p734_p6 = scmp.ne.s32.totalorder %s1146_s28, 0  ;;  %s755_s24 = sshll.u32 %s985_s18, 8 }
  0x75   : > { %s1157_s26 = scalar_lea.hbm %s1272_s2, %s755_s24  ;;  %s228_s7 = sshll.u32 %s214_s14, 4  ;;  %s229_s7 = int_to_ptr.vmem [resolvable:$true] %s228_s7 }
  0x76   : > { %s889_s8 = scalar_lea.hbm %s1157_s26, %s1146_s28  ;;  %s893_s13 = scalar_lea.hbm %s1272_s2, 640 }
  0x77   : > { %p890_p5 = scmp.ne.s32.totalorder %s1157_s26, %s889_s8  ;;  %p894_p10 = scmp.lt.u32.totalorder %s1157_s26, %s1272_s2 }
  0x78   : > { %p895_p11 = scmp.lt.u32.totalorder %s893_s13, %s889_s8  ;;  %p897_p12 = scmp.lt.u32.totalorder %s889_s8, %s1157_s26 }
  0x79   : > { %p891_p7 = pnand %p890_p5, %p734_p6 }
  0x7a   : > { %p896_p0 = por %p895_p11, %p894_p10 }
  0x7b   : > { %p892_p8 = pneg %p891_p7 }
  0x7c   : > { %p898_p4 = por %p897_p12, %p896_p0 }
  0x7e   : > { %p899_p9 = pnand %p898_p4, %p892_p8 }
  0x80   : > { %902 = shalt.err (!%p899_p9)
}
  0x81   : > { %s903_s6 = scalar_lea.vmem %s229_s7, %s1146_s28  ;;  %s989_s11 = smov [#allocation12]  }
  0x82   : > { %p904_p13 = scmp.ne.s32.totalorder %s229_s7, %s903_s6  ;;  %s907_s12 = sshll.u32 %s989_s11, 4  ;;  %s908_s12 = int_to_ptr.vmem [resolvable:$false] %s907_s12 }
  0x83   : > { %s909_s27 = scalar_lea.vmem %s908_s12, 512  ;;  %p910_p3 = scmp.lt.s32.totalorder %s229_s7, %s908_s12 }
  0x84   : > { %p905_p2 = pnand %p904_p13, %p734_p6  ;;  %p911_p5 = scmp.lt.s32.totalorder %s909_s27, %s903_s6 }
  0x86   : > { %p906_p1 = pneg %p905_p2  ;;  %p912_p7 = por %p911_p5, %p910_p3 }
  0x88   : > { %p913_p10 = pnand %p912_p7, %p906_p1 }
  0x8a   : > { %916 = shalt.err (!%p913_p10)
}
  0x8b   : > { %231 = dma.hbm_to_vmem [thread:$0]  (%p734_p6), %s1157_s26, %s1146_s28, %s229_s7, %s1149_s5  }
  0x8c PF: > { %p738_p8 = scmp.ge.s32.totalorder %s985_s18, 1  ;;  %p233_p11 = scmp.lt.s32.totalorder %s985_s18, 4 }
  0x8e   : > { %p234_p0 = pnand %p738_p8, %p233_p11 }
  0x8f   : > { %s239_s29 = sand.u32 (!%p234_p0), 1, %s977_s16   ;;  %p1285_p12 = scmp.ne.s32.totalorder (!%p234_p0), %s1280_s25, 0 }
  0x90   : > { %237 = sbr.rel (%p234_p0) target bundleno = 1030 (0x406), region = 32  ;;  %s1183_s14 = sshll.u32 (!%p234_p0), %s239_s29, 4 }
  0x91   : > { %s240_s24 = scalar_lea.sflag (!%p234_p0), [#allocation8], %s239_s29  ;;  %s243_s21 = scalar_lea.vmem (!%p234_p0), [#allocation7], %s1183_s14 }
  0x97   : > { %960 = dma.done.wait (%p1285_p12), %s240_s24, 256  }
  0x98   : > { %962 = vsyncadd (%p1285_p12), %s240_s24, 4294967040  ;;  %s248_s28 = sand.u32 1, %s1039_s19   ;;  %s252_s5 = scalar_lea.vmem [#allocation10], %s1183_s14 }
  0x99   : > { %s249_s18 = scalar_lea.sflag [#allocation11], %s248_s28 }
  0x9a   : > { %964 = dma.done.wait (%p1285_p12), %s249_s18, 512  }
  0x9b   : > { %966 = vsyncadd (%p1285_p12), %s249_s18, 4294966784  ;;  %s261_s22 = scalar_lea.vmem [#allocation12], %s1183_s14  ;;  %p742_p6 = scmp.ne.s32.totalorder %s1039_s19, 0 }
  0x9c   : > { %v990_v0 = vmov (!%p742_p6), 0.0  }
  0x9d   : > { %309 = sbr.rel (%p742_p6) target bundleno = 164 (0xa4), region = 48  ;;  %310 = vst [vmem:[#allocation2] sm:$0xff] (!%p742_p6), %v990_v0  ;;  %311 = vst [vmem:[#allocation3] sm:$0xff] (!%p742_p6), %v990_v0 }
  0x9e   : > { %312 = vst [vmem:[#allocation4] sm:$0xff] (!%p742_p6), %v990_v0  ;;  %313 = vst [vmem:[#allocation5] sm:$0xff] (!%p742_p6), %v990_v0 }
  0x9f   : > { %314 = vst [vmem:[#allocation6] sm:$0xff] (!%p742_p6), %v990_v0 }
  0xa4 PF: > { %v315_v1 = vlaneseq  ;;  %s743_s26 = sshll.u32 %s1039_s19, 8  ;;  %v318_v5 = vld [vmem:[%s243_s21] sm:$0xff]  ;;  %v337_v9 = vld [vmem:[%s243_s21 + $0x8] sm:$0xff]  ;;  %p744_p4 = scmp.ne.s32.totalorder %s1039_s19, 2 }
  0xa5   : > { %v321_v2 = vstv %s743_s26  ;;  %s340_s7 = sadd.s32 128, %s743_s26  ;;  %v319_v6 = vld [vmem:[%s252_s5] sm:$0xff]  ;;  %v338_v11 = vld [vmem:[%s252_s5 + $0x8] sm:$0xff]  ;;  %v991_v46 = vmov (!%p744_p4), 0.0   ;;  %vm394_vm2 = vcmask (!%p744_p4), 7168   ;;  %vm992_vm4 = vmmov (!%p744_p4), 0  }
  0xa6   : > { %v1200_v3 = vand.u32 127, %v315_v1  ;;  %v341_v4 = vstv %s340_s7  ;;  %v320_v7 = vld [vmem:[%s261_s22] sm:$0xff]  ;;  %v339_v12 = vld [vmem:[%s261_s22 + $0x8] sm:$0xff]  ;;  %758 = vmatprep.subr.mxu0 (!%p744_p4), %v991_v46  ;;  %v480_v53 = vshrl.u32 (!%p744_p4), %v315_v1, 7  ;;  %760 = vmatprep.mubr.msk.f32.mxu0 (!%p744_p4), %vm992_vm4, %v991_v46  ;;  %vm484_vm5 = vcmask (!%p744_p4), 64512   ;;  %s993_s8 = smov (!%p744_p4), 0.0  }
  0xa7   : > { %v366_v21 = vld [vmem:[#allocation5] sm:$0xff]  ;;  %v363_v28 = vld [vmem:[#allocation4] sm:$0xff]  ;;  %v369_v34 = vld [vmem:[#allocation6] sm:$0xff] }
  0xa8   : > { %v322_v8 = vadd.s32 %v321_v2, %v1200_v3  ;;  %v342_v10 = vadd.s32 %v341_v4, %v1200_v3  ;;  %v357_v35 = vld [vmem:[#allocation2] sm:$0xff]  ;;  %v360_v36 = vld [vmem:[#allocation3] sm:$0xff]  ;;  %vm481_vm3 = vcmp.ge.s32.totalorder (!%p744_p4), %v480_v53, %v1200_v3  ;;  %vm583_vm8 = vcmp.eq.s32.totalorder (!%p744_p4), %v1200_v3, 1 }
  0xa9   : > { %v746_v54 = vsel (!%p744_p4), %vm481_vm3, 1.0, %v991_v46  ;;  %vm580_vm9 = vcmp.eq.s32.totalorder (!%p744_p4), %v1200_v3, 0  ;;  %vm587_vm10 = vcmp.eq.s32.totalorder (!%p744_p4), %v1200_v3, 2  ;;  %vm591_vm11 = vcmp.eq.s32.totalorder (!%p744_p4), %v1200_v3, 3 }
  0xaa   : > { %vm323_vm0 = vcmp.lt.s32.totalorder %v322_v8, 600  ;;  %vm343_vm1 = vcmp.lt.s32.totalorder %v342_v10, 600  ;;  %vm595_vm12 = vcmp.eq.s32.totalorder (!%p744_p4), %v1200_v3, 4  ;;  %vm599_vm13 = vcmp.eq.s32.totalorder (!%p744_p4), %v1200_v3, 5 }
  0xab   : > { %v324_v13 = vsel %vm323_vm0, %v318_v5, 0.0  ;;  %v325_v14 = vsel %vm323_vm0, %v319_v6, 0.0  ;;  %v326_v15 = vsel %vm323_vm0, %v320_v7, 0.0  ;;  %v344_v16 = vsel %vm343_vm1, %v337_v9, 0.0 }
  0xac   : > { %v327_v17 = vmul.f32 %v326_v15, %v324_v13  ;;  %v345_v18 = vsel %vm343_vm1, %v338_v11, 0.0  ;;  %v346_v19 = vsel %vm343_vm1, %v339_v12, 0.0  ;;  %v332_v20 = vmul.f32 %v324_v13, %v324_v13 }
  0xad   : > { %v347_v22 = vmul.f32 %v346_v19, %v344_v16  ;;  %v352_v23 = vmul.f32 %v344_v16, %v344_v16  ;;  %v354_v24 = vadd.f32 %v346_v19, %v326_v15  ;;  %v335_v25 = vmul.f32 %v326_v15, %v326_v15 }
  0xae   : > { %v328_v26 = vmul.f32 %v327_v17, %v325_v14  ;;  %v330_v27 = vand.u32 2147483647, %v327_v17  ;;  %v355_v29 = vmul.f32 %v346_v19, %v346_v19  ;;  %vm603_vm14 = vcmp.eq.s32.totalorder (!%p744_p4), %v1200_v3, 6 }
  0xaf   : > { %v348_v30 = vmul.f32 %v347_v22, %v345_v18  ;;  %v350_v31 = vand.u32 2147483647, %v347_v22  ;;  %v353_v32 = vadd.f32 %v352_v23, %v332_v20  ;;  %v367_v33 = vadd.f32 %v366_v21, %v354_v24  ;;  %375 = sbr.rel (%p744_p4) target bundleno = 1005 (0x3ed), region = 52 }
  0xb0   : > { %v356_v37 = vadd.f32 %v355_v29, %v335_v25 }
  0xb1   : > { %v349_v38 = vadd.f32 %v348_v30, %v328_v26  ;;  %v351_v39 = vadd.f32 %v350_v31, %v330_v27  ;;  %v364_v40 = vadd.f32 %v363_v28, %v353_v32  ;;  %368 = vst [vmem:[#allocation5] sm:$0xff] %v367_v33 }
  0xb2   : > { %v370_v41 = vadd.f32 %v369_v34, %v356_v37 }
  0xb3   : > { %v358_v42 = vadd.f32 %v357_v35, %v349_v38  ;;  %v361_v43 = vadd.f32 %v360_v36, %v351_v39  ;;  %365 = vst [vmem:[#allocation4] sm:$0xff] %v364_v40 }
  0xb4   : > { %371 = vst [vmem:[#allocation6] sm:$0xff] %v370_v41 }
  0xb5   : > { %359 = vst [vmem:[#allocation2] sm:$0xff] %v358_v42  ;;  %362 = vst [vmem:[#allocation3] sm:$0xff] %v361_v43 }
  0xb8   : > { %v385_v55 = vld [vmem:[#allocation5] sm:$0xff] }
  0xba   : > { %v382_v56 = vld [vmem:[#allocation4] sm:$0xff] }
  0xbb   : > { %v388_v5 = vld [vmem:[#allocation6] sm:$0xff] }
  0xbc   : > { %v379_v44 = vld [vmem:[#allocation3] sm:$0xff]  ;;  %v376_v45 = vld [vmem:[#allocation2] sm:$0xff] }
  0xbd   : > { %380 = vadd.xlane.f32.xlu0 %v379_v44 }
  0xc1   : > { %377 = vadd.xlane.f32.xlu0 %v376_v45 }
  0xc5   : > { %386 = vadd.xlane.f32.xlu0 %v385_v55 }
  0xc9   : > { %383 = vadd.xlane.f32.xlu0 %v382_v56 }
 0x14a   : > { %v381_v47 = vpop.xlane.xlu0 %380 }
 0x14b   : > { %v391_v48 = vadd.f32 1e-08, %v381_v47 }
 0x14d   : > { %825 = vrcp.f32 %v391_v48 }
 0x14e   : > { %v378_v49 = vpop.xlane.xlu0 %377 }
 0x152   : > { %v387_v6 = vpop.xlane.xlu0 %386 }
 0x153   : > { %v459_v11 = vmul.f32 %v387_v6, %v387_v6 }
 0x155   : > { %v461_v13 = vmul.f32 0.0016666667, %v459_v11 }
 0x156   : > { %v384_v7 = vpop.xlane.xlu0 %383 }
 0x157   : > { %v826_v50 = vpop.eup %825  ;;  %v443_v8 = vsel %vm394_vm2, %v384_v7, 0.0 }
 0x158   : > { %v393_v51 = vmul.f32 %v826_v50, %v378_v49 }
 0x15a   : > { %759 = vmatpush3.msra.mxu0 %v393_v51  ;;  %v395_v52 = vsel %vm394_vm2, %v393_v51, 0.0  ;;  %579 = vst.msk [vmem:[%s1274_s4] sm:$0xff] %vm394_vm2, %v393_v51 }
 0x15b   : > { %396 = vadd.xlane.f32.xlu1 %v395_v52  ;;  %761 = vmatmul.mubr.msk.f32.vlgmr.msra.gmra.mrb[0].mxu0 %vm484_vm5, %v746_v54 }
 0x1e8   : > { %v397_v57 = vpop.xlane.xlu1 %396 }
 0x1e9   : > { %v398_v58 = vrot.slane %v397_v57, 4 }
 0x1eb   : > { %v399_v59 = vadd.f32 %v398_v58, %v397_v57 }
 0x1ed   : > { %v400_v60 = vrot.slane %v399_v59, 2 }
 0x1ef   : > { %v401_v61 = vadd.f32 %v400_v60, %v399_v59 }
 0x1f1   : > { %v402_v62 = vrot.slane %v401_v61, 1 }
 0x1f3   : > { %v403_v63 = vadd.f32 %v402_v62, %v401_v61 }
 0x1f5   : > { %763 = vpush %v403_v63 }
 0x226   : > { %s1212_s9 = spop %763 }
 0x227   : > { %s407_s10 = smul.f32 0.125, %s1212_s9 }
 0x229   : > { %v408_v0 = vstv %s407_s10  ;;  %s434_s12 = smul.f32 252.0, %s407_s10 }
 0x22a   : > { %v409_v1 = vsub.f32 %v393_v51, %v408_v0 }
 0x22c   : > { %v410_v2 = vmul.f32 %v409_v1, %v409_v1 }
 0x22e   : > { %v411_v4 = vsel %vm394_vm2, %v410_v2, 0.0  ;;  %v554_v9 = vpop.f32.mrb[0].mxu0 }
 0x22f   : > { %412 = vadd.xlane.f32.xlu1 %v411_v4  ;;  %v762_v10 = vpop.f32.mrb[1].mxu0 }
 0x233   : > { %389 = vadd.xlane.f32.xlu1 %v388_v5 }
 0x237   : > { %444 = vadd.xlane.f32.xlu1 %v443_v8 }
 0x23b   : > { %558 = vmax.xlane.f32.xlu1 %v554_v9 }
 0x2bc   : > { %v413_v12 = vpop.xlane.xlu1 %412 }
 0x2bd   : > { %v414_v14 = vrot.slane %v413_v12, 4 }
 0x2bf   : > { %v415_v15 = vadd.f32 %v414_v14, %v413_v12 }
 0x2c0   : > { %v390_v16 = vpop.xlane.xlu1 %389 }
 0x2c1   : > { %v416_v17 = vrot.slane %v415_v15, 2  ;;  %v462_v18 = vsub.f32 %v390_v16, %v461_v13 }
 0x2c3   : > { %v464_v19 = vmul.f32 0.001669449, %v462_v18  ;;  %v417_v20 = vadd.f32 %v416_v17, %v415_v15 }
 0x2c4   : > { %v445_v30 = vpop.xlane.xlu1 %444 }
 0x2c5   : > { %v465_v21 = vsel %vm394_vm2, %v464_v19, 0.0  ;;  %v418_v22 = vrot.slane %v417_v20, 1  ;;  %v446_v31 = vrot.slane %v445_v30, 4 }
 0x2c6   : > { %466 = vadd.xlane.f32.xlu0 %v465_v21 }
 0x2c7   : > { %v419_v23 = vadd.f32 %v418_v22, %v417_v20  ;;  %v447_v32 = vadd.f32 %v446_v31, %v445_v30 }
 0x2c8   : > { %v559_v36 = vpop.xlane.xlu1 %558 }
 0x2c9   : > { %765 = vpush %v419_v23  ;;  %v448_v33 = vrot.slane %v447_v32, 2  ;;  %v560_v38 = vrot.slane %v559_v36, 4 }
 0x2cb   : > { %v449_v35 = vadd.f32 %v448_v33, %v447_v32  ;;  %v561_v41 = vmax.f32 %v559_v36, %v560_v38 }
 0x2cd   : > { %v450_v37 = vrot.slane %v449_v35, 1  ;;  %v562_v42 = vrot.slane %v561_v41, 2 }
 0x2cf   : > { %v451_v39 = vadd.f32 %v450_v37, %v449_v35  ;;  %v563_v46 = vmax.f32 %v561_v41, %v562_v42 }
 0x2d1   : > { %v564_v49 = vrot.slane %v563_v46, 1 }
 0x2d3   : > { %v565_v52 = vmax.f32 %v563_v46, %v564_v49 }
 0x2fa   : > { %s766_s13 = spop %765 }
 0x2fb   : > { %s423_s15 = smul.f32 0.14285715, %s766_s13 }
 0x2fd   : > { %v424_v24 = vstv %s423_s15 }
 0x2fe   : > { %827 = vrsqrt.f32 %v424_v24  ;;  %vm427_vm6 = vcmp.eq.f32.partialorder %v424_v24, inf  ;;  %v430_v27 = vand.u32 2147483648, %v424_v24  ;;  %vm429_vm7 = vcmp.eq.f32.partialorder %v424_v24, 0.0 }
 0x308   : > { %v828_v25 = vpop.eup %827 }
 0x309   : > { %v426_v26 = vmul.f32 %v828_v25, %v424_v24 }
 0x30b   : > { %v428_v28 = vsel %vm427_vm6, %v424_v24, %v426_v26 }
 0x30c   : > { %v431_v29 = vsel %vm429_vm7, %v430_v27, %v428_v28 }
 0x30d   : > { %767 = vpush %v431_v29 }
 0x33e   : > { %s768_s30 = spop %767 }
 0x33f   : > { %s433_s6 = sadd.f32 1e-08, %s768_s30 }
 0x341   : > { %s435_s11 = smul.f32 15.874508, %s433_s6 }
 0x343   : > { %v436_v34 = vstv %s435_s11 }
 0x344   : > { %829 = vrcp.f32 %v436_v34 }
 0x34e   : > { %v830_v40 = vpop.eup %829 }
 0x34f   : > { %769 = vpush %v830_v40 }
 0x350   : > { %771 = vpush %v451_v39 }
 0x353   : > { %v467_v43 = vpop.xlane.xlu0 %466 }
 0x354   : > { %v468_v44 = vrot.slane %v467_v43, 4 }
 0x356   : > { %v469_v45 = vadd.f32 %v468_v44, %v467_v43 }
 0x358   : > { %v470_v47 = vrot.slane %v469_v45, 2 }
 0x35a   : > { %v471_v48 = vadd.f32 %v470_v47, %v469_v45 }
 0x35c   : > { %v472_v50 = vrot.slane %v471_v48, 1 }
 0x35e   : > { %v473_v51 = vadd.f32 %v472_v50, %v471_v48 }
 0x360   : > { %773 = vpush %v473_v51 }
 0x361   : > { %775 = vpush %v565_v52 }
 0x380   : > { %s770_s27 = spop %769 }
 0x381   : > { %s1222_s29 = smul.f32 %s770_s27, %s434_s12  ;;  %s772_s14 = spop %771 }
 0x382   : > { %s455_s18 = smul.f32 0.125, %s772_s14 }
 0x383   : > { %s440_s22 = ssub.f32 2.0, %s1222_s29  ;;  %v588_v56 = vstv %s1222_s29 }
 0x384   : > { %s745_s5 = sadd.f32 -0.01, %s455_s18  ;;  %v589_v62 = vsel %vm587_vm10, %v588_v56, 0.0 }
 0x385   : > { %s441_s15 = smax.f32 %s993_s8, %s440_s22 }
 0x386   : > { %s457_s10 = smax.f32 %s993_s8, %s745_s5  ;;  %s442_s12 = smul.f32 %s441_s15, %s441_s15 }
 0x387   : > { %s458_s11 = smul.f32 10.0, %s457_s10 }
 0x388   : > { %v584_v55 = vstv %s442_s12 }
 0x389   : > { %v585_v58 = vsel %vm583_vm8, %v584_v55, 0.0  ;;  %v592_v60 = vstv %s458_s11 }
 0x38a   : > { %v593_v1 = vsel %vm591_vm11, %v592_v60, 0.0 }
 0x391   : > { %s774_s24 = spop %773 }
 0x392   : > { %s776_s21 = spop %775  ;;  %s477_s26 = smul.f32 0.125, %s774_s24 }
 0x393   : > { %s568_s28 = sadd.f32 1e-08, %s776_s21 }
 0x394   : > { %s567_s7 = ssub.f32 %s776_s21, %s1212_s9  ;;  %s478_s30 = smul.f32 0.1, %s477_s26 }
 0x395   : > { %v569_v53 = vstv %s568_s28 }
 0x396   : > { %831 = vrcp.f32 %v569_v53  ;;  %s576_s28 = sadd.f32 %s478_s30, %s458_s11  ;;  %v596_v63 = vstv %s478_s30 }
 0x397   : > { %v597_v5 = vsel %vm595_vm12, %v596_v63, 0.0 }
 0x3a0   : > { %v832_v54 = vpop.eup %831 }
 0x3a1   : > { %777 = vpush %v832_v54 }
 0x3d2   : > { %s778_s25 = spop %777 }
 0x3d3   : > { %s572_s13 = smul.f32 %s778_s25, %s567_s7 }
 0x3d5   : > { %s748_s6 = sadd.f32 -0.15, %s572_s13 }
 0x3d7   : > { %s574_s27 = smax.f32 %s993_s8, %s748_s6 }
 0x3d8   : > { %s575_s0 = smul.f32 20.0, %s574_s27 }
 0x3da   : > { %s577_s1 = sadd.f32 %s576_s28, %s575_s0  ;;  %v600_v4 = vstv %s575_s0 }
 0x3db   : > { %v601_v8 = vsel %vm599_vm13, %v600_v4, 0.0 }
 0x3dc   : > { %s578_s14 = sadd.f32 %s577_s1, %s442_s12  ;;  %v604_v7 = vstv %s577_s1 }
 0x3dd   : > { %v605_v10 = vsel %vm603_vm14, %v604_v7, 0.0 }
 0x3de   : > { %v581_v57 = vstv %s578_s14 }
 0x3df   : > { %v582_v59 = vsel %vm580_vm9, %v581_v57, 0.0 }
 0x3e0   : > { %v586_v61 = vadd.f32 %v585_v58, %v582_v59 }
 0x3e2   : > { %v590_v0 = vadd.f32 %v589_v62, %v586_v61 }
 0x3e4   : > { %v594_v2 = vadd.f32 %v593_v1, %v590_v0 }
 0x3e6   : > { %v598_v6 = vadd.f32 %v597_v5, %v594_v2 }
 0x3e8   : > { %v602_v9 = vadd.f32 %v601_v8, %v598_v6 }
 0x3ea   : > { %v606_v11 = vadd.f32 %v605_v10, %v602_v9 }
 0x3ec   : > { %607 = vst [vmem:[#allocation13] sm:$0x1] %v606_v11 }
 0x3ed PF: > { %p786_p9 = scmp.eq.s32.totalorder %s1039_s19, 2  ;;  %s994_s9 = smov [#allocation13]  }
 0x3ee   : > { %s615_s29 = sshll.u32 %s994_s9, 4  ;;  %s616_s29 = int_to_ptr.vmem [resolvable:$true] %s615_s29 }
 0x3ef   : > { %s917_s24 = scalar_lea.vmem %s616_s29, 16  ;;  %s923_s0 = scalar_lea.vmem %s616_s29, 32 }
 0x3f0   : > { %p918_p13 = scmp.ne.s32.totalorder %s616_s29, %s917_s24  ;;  %p924_p3 = scmp.lt.s32.totalorder %s616_s29, %s616_s29 }
 0x3f1   : > { %p925_p5 = scmp.lt.s32.totalorder %s923_s0, %s917_s24 }
 0x3f2   : > { %p919_p2 = pnand %p918_p13, %p786_p9 }
 0x3f3   : > { %p926_p7 = por %p925_p5, %p924_p3 }
 0x3f4   : > { %p920_p1 = pneg %p919_p2 }
 0x3f6   : > { %p927_p10 = pnand %p926_p7, %p920_p1 }
 0x3f8   : > { %930 = shalt.err (!%p927_p10)
}
 0x3f9   : > { %s931_s18 = scalar_lea.hbm %s1273_s3, 16 }
 0x3fa   : > { %p932_p8 = scmp.ne.s32.totalorder %s1273_s3, %s931_s18  ;;  %p937_p12 = scmp.lt.u32.totalorder %s931_s18, %s1273_s3 }
 0x3fc   : > { %p933_p11 = pnand %p932_p8, %p786_p9 }
 0x3fe   : > { %p934_p0 = pneg %p933_p11 }
 0x400   : > { %p939_p6 = pnand %p937_p12, %p934_p0 }
 0x402   : > { %942 = shalt.err (!%p939_p6)
}
 0x403   : > { %783 = dma.vmem_to_hbm [thread:$0]  (%p786_p9), %s616_s29, 16, %s1273_s3, [#allocation9]  }
 0x404   : > { %968 = dma.done.wait (%p786_p9), [#allocation9], 16  }
 0x405   : > { %970 = vsyncadd (%p786_p9), [#allocation9], 4294967280 }
 0x406 PF: > { %p19_p4 = scmp.ge.s32.totalorder %s1042_s20, 5   ;;  %s1286_s15 = smov %s977_s16 }
 0x407   : > { %s1287_s16 = smov %s981_s17  ;;  %s1288_s17 = smov %s1052_s23 }
 0x408   : > { %s1289_s18 = smov %s1042_s20  ;;  %21 = sbr.rel (!%p19_p4) target bundleno = 9 (0x9), region = 109 }
 0x40f   :  { %634 = vsyncpa [#allocation8], 1 }
 0x410   :  { %636 = vsyncpa [#allocation8 + $0x1], 1 }
 0x411   :  { %637 = vsyncpa [#allocation11], 1 }
 0x412   :  { %639 = vsyncpa [#allocation11 + $0x1], 1 }
 0x413   :  { %640 = vsyncpa [#allocation9], 1 }
 0x414   :  { %642 = vsyncpa [#allocation9 + $0x1], 1 }

</bundles_post_ra>
